<compile_context>
chip_gen: v6e
topology: v6e:2x2x1
jax: 0.10.0
libtpu: 0.0.40
codegen_flags: <defaults>
</compile_context>

<pallas_src>
import functools

import jax
import jax.numpy as jnp
from jax.experimental import pallas as pl
from jax.experimental.pallas import tpu as pltpu

EPS = 1e-12                        # matches `esp` in the PyTorch reference
_TILE_BYTES_F32 = 4 * 1024 * 1024  # target f32-equivalent footprint / input tile
_VMEM_LIMIT = 48 * 1024 * 1024     # < 64 MiB physical VMEM on v7x


def _round_up(x, m):
    return ((x + m - 1) // m) * m


def _detect_num_cores():
    """Use a 2-way core split only on v7x (2 TensorCores / chip)."""
    try:
        kind = jax.devices()[0].device_kind.lower()
    except Exception:
        return 1
    return 2 if ("v7" in kind or "7x" in kind) else 1


def _mfl_kernel(p_ref, g_ref, acc_ref, *, n_rows, tile_n, n_cols, steps, ragged):
    c = pl.program_id(0)   # core axis ("parallel")
    k = pl.program_id(1)   # reduction axis ("arbitrary")

    @pl.when(k == 0)
    def _():
        acc_ref[...] = jnp.zeros_like(acc_ref)

    # Native-dtype DMA; widen to f32 after the load (cheap on the VPU).
    p = p_ref[...].astype(jnp.float32)
    g = g_ref[...].astype(jnp.float32)
    # Elementwise fidelity term: VPU mults/adds, sqrt on the EUP.
    loss = 1.0 - (jnp.sqrt(p * g + EPS) + jnp.sqrt((1.0 - p) * (1.0 - g) + EPS))

    # VPU-only partial reduction: fold row groups of 8 (the native sublane tile,
    # so the reshape is a layout no-op) into a resident (8, n_cols) accumulator.
    # The final cross-lane collapse to a scalar happens once, in the wrapper.
    def _fold(x):
        if tile_n % 8 == 0:
            return x.reshape(tile_n // 8, 8, n_cols).sum(axis=0)
        # Tiny full-array block (N < sublane multiple): one cross-sublane sum,
        # placed in sublane 0 of the accumulator.
        sel = (jax.lax.broadcasted_iota(jnp.int32, (8, 1), 0) == 0)
        return sel.astype(jnp.float32) * jnp.sum(x, axis=0, keepdims=True)

    if not ragged:
        # Static: the grid covers N exactly -> no masking anywhere.
        acc_ref[0] += _fold(loss)
    else:
        rows_valid = n_rows - (c * steps + k) * tile_n   # in-range rows, this block

        @pl.when(rows_valid >= tile_n)   # hot path: fully in-range block, no mask
        def _():
            acc_ref[0] += _fold(loss)

        @pl.when(rows_valid < tile_n)    # cold path: the (rare) ragged block
        def _():
            rid = jax.lax.broadcasted_iota(jnp.int32, (tile_n, n_cols), 0)
            acc_ref[0] += _fold(jnp.where(rid < rows_valid, loss, 0.0))


def multi_fidelity_loss(p, g):
    """Pallas TPU implementation of Multi_Fidelity_Loss.forward(p, g) -> scalar."""
    assert p.shape == g.shape and p.ndim == 2
    N, C = p.shape
    total = N * C
    itemsize = jnp.dtype(p.dtype).itemsize

    # Packed-sublane multiple for the input dtype: f32 -> 8, bf16 -> 16, int8 -> 32.
    sub_mult = 8 * max(1, 4 // itemsize)
    num_cores = max(1, min(_detect_num_cores(), N // sub_mult))

    # Tile sizing: biggest row block whose f32-equivalent footprint stays around
    # _TILE_BYTES_F32 (VMEM lane-pads the last dim to a multiple of 128).
    # TODO(synk): an extremely wide C (single 8-row block exceeding VMEM) would
    # need a second grid axis over columns; irrelevant for (batch, num_outputs).
    lane_c = _round_up(C, 128)
    max_rows = max(sub_mult, (_TILE_BYTES_F32 // (lane_c * 4)) // sub_mult * sub_mult)

    if N >= sub_mult:
        rows_per_core = pl.cdiv(N, num_cores)
        tile_n = min(max_rows, _round_up(rows_per_core, sub_mult),
                     (N // sub_mult) * sub_mult)
    else:
        tile_n = N   # full-dim block (exempt from the sublane-multiple rule)
    steps = pl.cdiv(pl.cdiv(N, num_cores), tile_n)
    ragged = (num_cores * steps * tile_n) != N

    kernel = functools.partial(
        _mfl_kernel,
        n_rows=N, tile_n=tile_n, n_cols=C, steps=steps, ragged=ragged,
    )

    partials = pl.pallas_call(
        kernel,
        out_shape=jax.ShapeDtypeStruct((num_cores, 8, C), jnp.float32),
        grid_spec=pl.GridSpec(
            grid=(num_cores, steps),
            in_specs=[
                pl.BlockSpec((tile_n, C), lambda c, k: (c * steps + k, 0)),
                pl.BlockSpec((tile_n, C), lambda c, k: (c * steps + k, 0)),
            ],
            # Per-core resident accumulator block: same block across the
            # "arbitrary" axis, distinct block per core -> no cross-core races.
            out_specs=pl.BlockSpec((1, 8, C), lambda c, k: (c, 0, 0)),
        ),
        compiler_params=pltpu.CompilerParams(
            dimension_semantics=("parallel", "arbitrary"),
            vmem_limit_bytes=_VMEM_LIMIT,
        ),
        cost_estimate=pl.CostEstimate(
            flops=10 * total,
            transcendentals=2 * total,
            bytes_accessed=2 * total * itemsize + num_cores * 8 * C * 4,
        ),
    )(p, g)

    # Final cross-lane / cross-core collapse (tiny: num_cores x 8 x C elements).
    return jnp.sum(partials) / total


def _reference(p, g):
    p = p.astype(jnp.float32)
    g = g.astype(jnp.float32)
    return jnp.mean(
        1.0 - (jnp.sqrt(p * g + EPS) + jnp.sqrt((1.0 - p) * (1.0 - g) + EPS))
    )


if __name__ == "__main__":
    key = jax.random.PRNGKey(0)

    # Small shapes consistent with the module's (batch, num_outputs) convention.
    # Cases exercise: exact cover, ragged rows + non-128 C, lane-aligned C, and
    # the native low-precision (bf16) DMA path.
    cases = [
        ((32, 16), jnp.float32),
        ((37, 21), jnp.float32),
        ((16, 512), jnp.float32),
        ((64, 384), jnp.bfloat16),
    ]
    for idx, (shape, dtype) in enumerate(cases):
        k1, k2 = jax.random.split(jax.random.fold_in(key, idx))
        p = jax.random.uniform(k1, shape, dtype=dtype)
        g = jax.random.uniform(k2, shape, dtype=dtype)

        out = jax.block_until_ready(multi_fidelity_loss(p, g))
        ref = _reference(p, g)
        assert jnp.allclose(out, ref, rtol=1e-5, atol=1e-5), (shape, dtype, out, ref)

    print("KERNEL_OK")
</pallas_src>

<mosaic_0001>
module attributes {stable_mosaic.version = 11 : i64} {
  func.func @_mfl_kernel(%arg0: i32, %arg1: i32, %arg2: memref<32x16xf32, #tpu.memory_space<vmem>>, %arg3: memref<32x16xf32, #tpu.memory_space<vmem>>, %arg4: memref<1x8x16xf32, #tpu.memory_space<vmem>>) attributes {dimension_semantics = [#tpu.dimension_semantics<parallel>, #tpu.dimension_semantics<arbitrary>], iteration_bounds = array<i64: 1, 1>, scalar_prefetch = 0 : i64, scratch_operands = 0 : i64, tpu.core_type = #tpu.core_type<tc>, window_params = [{transform_indices = @transform_0, window_bounds = array<i64: 32, 16>}, {transform_indices = @transform_1, window_bounds = array<i64: 32, 16>}, {transform_indices = @transform_2, window_bounds = array<i64: 1, 8, 16>}]} {
    %c0_i32 = arith.constant 0 : i32
    %0 = arith.cmpi eq, %arg1, %c0_i32 : i32
    %1 = arith.extui %0 : i1 to i32
    %c0_i32_0 = arith.constant 0 : i32
    %2 = arith.cmpi ne, %1, %c0_i32_0 : i32
    scf.if %2 {
      %cst_15 = arith.constant 0.000000e+00 : f32
      %28 = vector.broadcast %cst_15 : f32 to vector<1x8x16xf32>
      %c0_16 = arith.constant 0 : index
      %c0_17 = arith.constant 0 : index
      %c0_18 = arith.constant 0 : index
      %29 = vector.load %arg4[%c0_16, %c0_17, %c0_18] : memref<1x8x16xf32, #tpu.memory_space<vmem>>, vector<1x8x16xf32>
      tpu.vector_store %arg4[%c0_16, %c0_17, %c0_18], %28 {strides = array<i32>} : memref<1x8x16xf32, #tpu.memory_space<vmem>>, vector<1x8x16xf32>,
    } else {
    }
    %c0 = arith.constant 0 : index
    %c0_1 = arith.constant 0 : index
    %3 = vector.load %arg2[%c0, %c0_1] : memref<32x16xf32, #tpu.memory_space<vmem>>, vector<32x16xf32>
    %c0_2 = arith.constant 0 : index
    %c0_3 = arith.constant 0 : index
    %4 = vector.load %arg3[%c0_2, %c0_3] : memref<32x16xf32, #tpu.memory_space<vmem>>, vector<32x16xf32>
    %5 = arith.mulf %3, %4 : vector<32x16xf32>
    %cst = arith.constant 9.99999996E-13 : f32
    %6 = vector.broadcast %cst : f32 to vector<32x16xf32>
    %7 = arith.addf %5, %6 : vector<32x16xf32>
    %8 = math.sqrt %7 : vector<32x16xf32>
    %cst_4 = arith.constant 1.000000e+00 : f32
    %9 = vector.broadcast %cst_4 : f32 to vector<32x16xf32>
    %10 = arith.subf %9, %3 : vector<32x16xf32>
    %cst_5 = arith.constant 1.000000e+00 : f32
    %11 = vector.broadcast %cst_5 : f32 to vector<32x16xf32>
    %12 = arith.subf %11, %4 : vector<32x16xf32>
    %13 = arith.mulf %10, %12 : vector<32x16xf32>
    %cst_6 = arith.constant 9.99999996E-13 : f32
    %14 = vector.broadcast %cst_6 : f32 to vector<32x16xf32>
    %15 = arith.addf %13, %14 : vector<32x16xf32>
    %16 = math.sqrt %15 : vector<32x16xf32>
    %17 = arith.addf %8, %16 : vector<32x16xf32>
    %cst_7 = arith.constant 1.000000e+00 : f32
    %18 = vector.broadcast %cst_7 : f32 to vector<32x16xf32>
    %19 = arith.subf %18, %17 : vector<32x16xf32>
    %c0_8 = arith.constant 0 : index
    %c0_9 = arith.constant 0 : index
    %c0_10 = arith.constant 0 : index
    %20 = vector.load %arg4[%c0_8, %c0_9, %c0_10] : memref<1x8x16xf32, #tpu.memory_space<vmem>>, vector<1x8x16xf32>
    %21 = vector.shape_cast %20 : vector<1x8x16xf32> to vector<8x16xf32>
    %22 = vector.shape_cast %19 : vector<32x16xf32> to vector<4x8x16xf32>
    %cst_11 = arith.constant dense<0.000000e+00> : vector<8x16xf32>
    %23 = vector.multi_reduction <add>, %22, %cst_11 [0] : vector<4x8x16xf32> to vector<8x16xf32>
    %24 = arith.addf %21, %23 : vector<8x16xf32>
    %c0_12 = arith.constant 0 : index
    %c0_13 = arith.constant 0 : index
    %c0_14 = arith.constant 0 : index
    %25 = vector.load %arg4[%c0_12, %c0_13, %c0_14] : memref<1x8x16xf32, #tpu.memory_space<vmem>>, vector<1x8x16xf32>
    %26 = vector.shape_cast %25 : vector<1x8x16xf32> to vector<8x16xf32>
    %27 = vector.shape_cast %24 : vector<8x16xf32> to vector<1x8x16xf32>
    tpu.vector_store %arg4[%c0_12, %c0_13, %c0_14], %27 {strides = array<i32>} : memref<1x8x16xf32, #tpu.memory_space<vmem>>, vector<1x8x16xf32>,
    return
  }
  func.func @transform_0(%arg0: i32, %arg1: i32) -> (i32, i32) {
    %c1_i32 = arith.constant 1 : i32
    %0 = arith.muli %arg0, %c1_i32 : i32
    %1 = arith.addi %0, %arg1 : i32
    %c0_i32 = arith.constant 0 : i32
    %c0_i32_0 = arith.constant 0 : i32
    return %1, %c0_i32 : i32, i32
  }
  func.func @transform_1(%arg0: i32, %arg1: i32) -> (i32, i32) {
    %c1_i32 = arith.constant 1 : i32
    %0 = arith.muli %arg0, %c1_i32 : i32
    %1 = arith.addi %0, %arg1 : i32
    %c0_i32 = arith.constant 0 : i32
    %c0_i32_0 = arith.constant 0 : i32
    return %1, %c0_i32 : i32, i32
  }
  func.func @transform_2(%arg0: i32, %arg1: i32) -> (i32, i32, i32) {
    %c0_i32 = arith.constant 0 : i32
    %c0_i32_0 = arith.constant 0 : i32
    %c0_i32_1 = arith.constant 0 : i32
    return %arg0, %c0_i32, %c0_i32_0 : i32, i32, i32
  }
}

</mosaic_0001>

<bundles_post_ra>
// kernel: tpu_custom_call.1
= control target key start
LH: loop header
LB: loop body
LE: loop exit
PB: predicated region body
PF: predicated region fallthrough
CT: control target
= control target key end

     0   :  { %vm60_vm0 = vcmask 130048   ;;  %v235_v3 = vmov 0.0   ;;  %s341_s0 = inlined_call_operand.vmem [shape: f32[32,16], index: 0, kind: input, shape index: {}]   ;;  %s342_s1 = inlined_call_operand.vmem [shape: f32[32,16], index: 1, kind: input, shape index: {}]   ;;  %s343_s2 = inlined_call_operand.hbm [shape: f32[1,8,16], index: 2, kind: output, shape index: {}]  }
   0x1   :  { %v62_v0 = vld [vmem:[%s341_s0] sm:$0xff]  ;;  %v63_v1 = vld [vmem:[%s341_s0 + $0x8] sm:$0xff]  ;;  %v64_v2 = vld [vmem:[%s341_s0 + $0x10] sm:$0xff]  ;;  %61 = vst.msk [vmem:[#allocation2] sm:$0xff] %vm60_vm0, %v235_v3 }
   0x2   :  { %v65_v4 = vld [vmem:[%s341_s0 + $0x18] sm:$0xff]  ;;  %v66_v5 = vld [vmem:[%s342_s1] sm:$0xff]  ;;  %v67_v6 = vld [vmem:[%s342_s1 + $0x8] sm:$0xff]  ;;  %v106_v7 = vsub.f32 1.0, %v62_v0  ;;  %v107_v8 = vsub.f32 1.0, %v63_v1  ;;  %v108_v13 = vsub.f32 1.0, %v64_v2 }
   0x3   :  { %v68_v9 = vld [vmem:[%s342_s1 + $0x10] sm:$0xff]  ;;  %v69_v10 = vld [vmem:[%s342_s1 + $0x18] sm:$0xff]  ;;  %v70_v11 = vmul.f32 %v66_v5, %v62_v0  ;;  %v71_v12 = vmul.f32 %v67_v6, %v63_v1  ;;  %v110_v14 = vsub.f32 1.0, %v66_v5 }
   0x4   :  { %7 = vsyncpa [#allocation3], 0  ;;  %v72_v15 = vmul.f32 %v68_v9, %v64_v2  ;;  %v73_v16 = vmul.f32 %v69_v10, %v65_v4  ;;  %v111_v17 = vsub.f32 1.0, %v67_v6  ;;  %v112_v18 = vsub.f32 1.0, %v68_v9  ;;  %s236_s0 = smov [#allocation2]  }
   0x5   :  { %v74_v19 = vadd.f32 1e-12, %v70_v11  ;;  %v277_v20 = vadd.f32 1e-12, %v71_v12  ;;  %v109_v23 = vsub.f32 1.0, %v65_v4  ;;  %v113_v24 = vsub.f32 1.0, %v69_v10 }
   0x6   :  { %v279_v21 = vadd.f32 1e-12, %v72_v15  ;;  %v281_v22 = vadd.f32 1e-12, %v73_v16  ;;  %v114_v25 = vmul.f32 %v110_v14, %v106_v7  ;;  %v115_v26 = vmul.f32 %v111_v17, %v107_v8  ;;  %s175_s1 = sshll.u32 %s236_s0, 4  ;;  %s176_s1 = int_to_ptr.vmem [resolvable:$true] %s175_s1 }
   0x7   :  { %197 = vrsqrt.f32 %v74_v19  ;;  %v116_v27 = vmul.f32 %v112_v18, %v108_v13  ;;  %v117_v28 = vmul.f32 %v113_v24, %v109_v23  ;;  %vm80_vm1 = vcmp.eq.f32.partialorder %v74_v19, inf  ;;  %s213_s25 = scalar_lea.vmem %s176_s1, 128  ;;  %p218_p1 = scmp.lt.s32.totalorder %s176_s1, %s176_s1 }
   0x8   :  { %199 = vrsqrt.f32 %v277_v20  ;;  %v118_v29 = vadd.f32 1e-12, %v114_v25  ;;  %v119_v30 = vadd.f32 1e-12, %v115_v26  ;;  %vm82_vm2 = vcmp.eq.f32.partialorder %v74_v19, 0.0  ;;  %v158_v23 = vld [vmem:[#allocation2] sm:$0xff]  ;;  %p214_p0 = scmp.ne.s32.totalorder %s176_s1, %s213_s25  ;;  %p219_p2 = scmp.lt.s32.totalorder %s213_s25, %s213_s25 }
   0x9   :  { %201 = vrsqrt.f32 %v279_v21  ;;  %v120_v31 = vadd.f32 1e-12, %v116_v27  ;;  %v286_v32 = vadd.f32 1e-12, %v117_v28  ;;  %v83_v36 = vand.u32 2147483648, %v74_v19 }
   0xa   :  { %203 = vrsqrt.f32 %v281_v22  ;;  %vm87_vm3 = vcmp.eq.f32.partialorder %v277_v20, inf  ;;  %vm89_vm4 = vcmp.eq.f32.partialorder %v277_v20, 0.0  ;;  %v90_v39 = vand.u32 2147483648, %v277_v20  ;;  %p220_p3 = por %p219_p2, %p218_p1 }
   0xb   :  { %205 = vrsqrt.f32 %v118_v29  ;;  %vm94_vm5 = vcmp.eq.f32.partialorder %v279_v21, inf  ;;  %vm96_vm6 = vcmp.eq.f32.partialorder %v279_v21, 0.0  ;;  %v97_v42 = vand.u32 2147483648, %v279_v21 }
   0xc   :  { %207 = vrsqrt.f32 %v119_v30  ;;  %vm101_vm7 = vcmp.eq.f32.partialorder %v281_v22, inf  ;;  %vm103_vm8 = vcmp.eq.f32.partialorder %v281_v22, 0.0  ;;  %v104_v44 = vand.u32 2147483648, %v281_v22  ;;  %p221_p4 = pnand %p220_p3, %p214_p0 }
   0xd   :  { %209 = vrsqrt.f32 %v120_v31  ;;  %vm124_vm9 = vcmp.eq.f32.partialorder %v118_v29, inf  ;;  %vm126_vm10 = vcmp.eq.f32.partialorder %v118_v29, 0.0  ;;  %v127_v46 = vand.u32 2147483648, %v118_v29 }
   0xe   :  { %211 = vrsqrt.f32 %v286_v32  ;;  %vm131_vm11 = vcmp.eq.f32.partialorder %v119_v30, inf  ;;  %vm133_vm12 = vcmp.eq.f32.partialorder %v119_v30, 0.0  ;;  %v134_v49 = vand.u32 2147483648, %v119_v30 }
   0xf   :  { %vm138_vm13 = vcmp.eq.f32.partialorder %v120_v31, inf  ;;  %vm140_vm14 = vcmp.eq.f32.partialorder %v120_v31, 0.0  ;;  %v141_v53 = vand.u32 2147483648, %v120_v31  ;;  %vm145_vm15 = vcmp.eq.f32.partialorder %v286_v32, inf }
  0x10   :  { %v148_v62 = vand.u32 2147483648, %v286_v32 }
  0x14   :  { %v198_v33 = vpop.eup %197 }
  0x15   :  { %v200_v34 = vpop.eup %199  ;;  %v79_v35 = vmul.f32 %v198_v33, %v74_v19 }
  0x16   :  { %v202_v37 = vpop.eup %201  ;;  %v86_v38 = vmul.f32 %v200_v34, %v277_v20 }
  0x17   :  { %v204_v40 = vpop.eup %203  ;;  %v93_v41 = vmul.f32 %v202_v37, %v279_v21  ;;  %v81_v45 = vsel %vm80_vm1, %v74_v19, %v79_v35  ;;  %vm147_vm1 = vcmp.eq.f32.partialorder %v286_v32, 0.0 }
  0x18   :  { %v100_v43 = vmul.f32 %v204_v40, %v281_v22  ;;  %v206_v47 = vpop.eup %205  ;;  %v88_v48 = vsel %vm87_vm3, %v277_v20, %v86_v38  ;;  %v84_v55 = vsel %vm82_vm2, %v83_v36, %v81_v45 }
  0x19   :  { %v208_v50 = vpop.eup %207  ;;  %v95_v51 = vsel %vm94_vm5, %v279_v21, %v93_v41  ;;  %v123_v52 = vmul.f32 %v206_v47, %v118_v29  ;;  %v91_v59 = vsel %vm89_vm4, %v90_v39, %v88_v48 }
  0x1a   :  { %v210_v54 = vpop.eup %209  ;;  %v102_v56 = vsel %vm101_vm7, %v281_v22, %v100_v43  ;;  %v130_v57 = vmul.f32 %v208_v50, %v119_v30  ;;  %v98_v63 = vsel %vm96_vm6, %v97_v42, %v95_v51 }
  0x1b   :  { %v212_v58 = vpop.eup %211  ;;  %v125_v60 = vsel %vm124_vm9, %v118_v29, %v123_v52  ;;  %v137_v61 = vmul.f32 %v210_v54, %v120_v31  ;;  %v105_v3 = vsel %vm103_vm8, %v104_v44, %v102_v56 }
  0x1c   :  { %v128_v0 = vsel %vm126_vm10, %v127_v46, %v125_v60  ;;  %v132_v1 = vsel %vm131_vm11, %v119_v30, %v130_v57  ;;  %v144_v2 = vmul.f32 %v212_v58, %v286_v32 }
  0x1d   :  { %v135_v4 = vsel %vm133_vm12, %v134_v49, %v132_v1  ;;  %v139_v5 = vsel %vm138_vm13, %v120_v31, %v137_v61  ;;  %v150_v6 = vadd.f32 %v128_v0, %v84_v55 }
  0x1e   :  { %v142_v7 = vsel %vm140_vm14, %v141_v53, %v139_v5  ;;  %v146_v8 = vsel %vm145_vm15, %v286_v32, %v144_v2  ;;  %v151_v9 = vadd.f32 %v135_v4, %v91_v59 }
  0x1f   :  { %v149_v10 = vsel %vm147_vm1, %v148_v62, %v146_v8  ;;  %v152_v11 = vadd.f32 %v142_v7, %v98_v63  ;;  %v154_v12 = vsub.f32 1.0, %v150_v6 }
  0x20   :  { %v153_v13 = vadd.f32 %v149_v10, %v105_v3  ;;  %v155_v14 = vsub.f32 1.0, %v151_v9 }
  0x21   :  { %v156_v15 = vsub.f32 1.0, %v152_v11  ;;  %v160_v16 = vsel %vm60_vm0, %v154_v12, 0.0 }
  0x22   :  { %v157_v17 = vsub.f32 1.0, %v153_v13  ;;  %v161_v18 = vsel %vm60_vm0, %v155_v14, 0.0 }
  0x23   :  { %v162_v19 = vadd.f32 %v161_v18, %v160_v16  ;;  %v163_v20 = vsel %vm60_vm0, %v156_v15, 0.0 }
  0x24   :  { %v165_v21 = vsel %vm60_vm0, %v157_v17, 0.0 }
  0x25   :  { %v164_v22 = vadd.f32 %v163_v20, %v162_v19 }
  0x27   :  { %v166_v24 = vadd.f32 %v165_v21, %v164_v22 }
  0x29   :  { %v167_v25 = vadd.f32 %v166_v24, %v158_v23 }
  0x2b   :  { %168 = vst.msk [vmem:[#allocation2] sm:$0xff] %vm60_vm0, %v167_v25 }
  0x2c   :  { %224 = shalt.err (!%p221_p4)
}
  0x2d   :  { %178 = dma.vmem_to_hbm [thread:$0]  %s176_s1, 128, %s343_s2, [#allocation3]  }
  0x2e   :  { %233 = dma.done.wait [#allocation3], 128  }
  0x2f   :  { %234 = vsyncadd [#allocation3], 4294967168 }
  0x30   :  { %182 = vsyncpa [#allocation3], 1 }

</bundles_post_ra>
